<compile_context>
chip_gen: v5e
topology: v5e:2x2
jax: 0.10.0
libtpu: 0.0.40
codegen_flags: <defaults>
</compile_context>

<pallas_src>
import numpy as np
import jax
import jax.numpy as jnp
from jax.experimental import pallas as pl
from jax.experimental.pallas import tpu as pltpu


def _round_up(v, m):
    return ((v + m - 1) // m) * m


# ----------------------------------------------------------------------------
# Parameter packing: one pre-padded (rows, 128) f32 slab holding w1,b1,w2,b2,w3,b3.
# The last layer's weight/bias are padded to 128 output lanes so the final store
# is lane-dense.
# ----------------------------------------------------------------------------
def _pack_params(params, outw):
    w1, b1 = params["w1"], params["b1"]
    w2, b2 = params["w2"], params["b2"]
    w3, b3 = params["w3"], params["b3"]
    F0, F1 = w1.shape
    F2 = w2.shape[1]
    F3 = w3.shape[1]

    o_w1 = 0
    o_b1 = o_w1 + _round_up(F0, 8)
    o_w2 = o_b1 + 8
    o_b2 = o_w2 + _round_up(F1, 8)
    o_w3 = o_b2 + 8
    o_b3 = o_w3 + _round_up(F2, 8)
    rows = o_b3 + 8

    P = jnp.zeros((rows, outw), jnp.float32)
    P = P.at[o_w1:o_w1 + F0, :F1].set(w1)
    P = P.at[o_b1:o_b1 + 1, :F1].set(b1)
    P = P.at[o_w2:o_w2 + F1, :F2].set(w2)
    P = P.at[o_b2:o_b2 + 1, :F2].set(b2)
    P = P.at[o_w3:o_w3 + F2, :F3].set(w3)   # zero-padded to `outw` output lanes
    P = P.at[o_b3:o_b3 + 1, :F3].set(b3)
    return P, (o_w1, o_b1, o_w2, o_b2, o_w3, o_b3)


# ----------------------------------------------------------------------------
# Fused 3-layer GCN kernel (single invocation, no grid)
# ----------------------------------------------------------------------------
def _make_kernel(F0, F1, F2, outw, offs):
    o_w1, o_b1, o_w2, o_b2, o_w3, o_b3 = offs

    def kernel(x_ref, adj_ref, p_ref, o_ref):
        # x_ref:   (BN, F0)   adj_ref: (BN, BN) block-diagonal
        # p_ref:   (rows, outw) packed params   o_ref: (BN, outw)
        # bf16 MXU operands, f32 accumulation / bias / ReLU.
        adj = adj_ref[...].astype(jnp.bfloat16)

        def layer(h_bf16, wo, fin, fout, bo, relu):
            w = p_ref[wo:wo + fin, 0:fout].astype(jnp.bfloat16)
            b = p_ref[bo:bo + 1, 0:fout]                                   # f32
            s = jnp.dot(h_bf16, w, preferred_element_type=jnp.float32)     # (BN, fout)
            out = jnp.dot(adj, s.astype(jnp.bfloat16),
                          preferred_element_type=jnp.float32) + b
            return jnp.maximum(out, 0.0) if relu else out

        h = layer(x_ref[...].astype(jnp.bfloat16), o_w1, F0, F1, o_b1, True)   # gc1+ReLU
        h = layer(h.astype(jnp.bfloat16), o_w2, F1, F2, o_b2, True)            # gc2+ReLU
        h = layer(h.astype(jnp.bfloat16), o_w3, F2, outw, o_b3, False)         # gc3 (padded)
        o_ref[...] = h                                                          # lane-dense store

    return kernel


def gcn_forward(x, adj, params):
    """Equivalent of GCN.forward: x -> gc1 -> relu -> gc2 -> relu -> gc3.

    x:   (B, N, nfeat) float32
    adj: (B, N, N)     float32
    returns (B, N, third_hidden) float32
    """
    B, N, F0 = x.shape
    F1 = params["w1"].shape[1]
    F2 = params["w2"].shape[1]
    F3 = params["w3"].shape[1]
    BN = B * N
    OUTW = _round_up(max(F3, 128), 128)     # lane-dense output width

    # Block-diagonal adjacency (BN, BN): turns the per-graph batched einsum into
    # one 2-D MXU matmul per layer. Zero blocks are free at this size.
    eye = jnp.eye(B, dtype=adj.dtype)
    adj_bd = (eye[:, :, None, None] * adj[:, None, :, :]) \
        .transpose(0, 2, 1, 3).reshape(BN, BN)

    x2d = x.reshape(BN, F0)
    packed, offs = _pack_params(params, OUTW)

    flops = 2 * BN * (F0 * F1 + BN * F1 + F1 * F2 + BN * F2 + F2 * OUTW + BN * OUTW)
    bytes_accessed = 4 * (x2d.size + adj_bd.size + packed.size + BN * OUTW)

    out2d = pl.pallas_call(
        _make_kernel(F0, F1, F2, OUTW, offs),
        out_shape=jax.ShapeDtypeStruct((BN, OUTW), jnp.float32),
        in_specs=[pl.BlockSpec(memory_space=pltpu.MemorySpace.VMEM)] * 3,
        out_specs=pl.BlockSpec(memory_space=pltpu.MemorySpace.VMEM),
        cost_estimate=pl.CostEstimate(flops=int(flops), transcendentals=0,
                                      bytes_accessed=int(bytes_accessed)),
    )(x2d, adj_bd, packed)

    # Contiguous slice/reshape back to the module's output layout.
    return out2d[:, :F3].reshape(B, N, F3)


# ----------------------------------------------------------------------------
# Deterministic parameter construction + demo run
# ----------------------------------------------------------------------------
def init_gcn_params(key, nfeat, h1, h2, h3):
    ks = jax.random.split(key, 6)

    def layer(kw, kb, fin, fout):
        s = 1.0 / np.sqrt(fin)
        w = jax.random.uniform(kw, (fin, fout), jnp.float32, -s, s)
        b = jax.random.uniform(kb, (1, fout), jnp.float32, -s, s)
        return w, b

    w1, b1 = layer(ks[0], ks[1], nfeat, h1)
    w2, b2 = layer(ks[2], ks[3], h1, h2)
    w3, b3 = layer(ks[4], ks[5], h2, h3)
    return {"w1": w1, "b1": b1, "w2": w2, "b2": b2, "w3": w3, "b3": b3}


def _reference_forward(x, adj, p):
    """Plain-JAX f32 reference (matches the assumed Kipf GraphConvolution)."""
    h = jnp.maximum(jnp.einsum("bij,bjf->bif", adj, x @ p["w1"]) + p["b1"], 0.0)
    h = jnp.maximum(jnp.einsum("bij,bjf->bif", adj, h @ p["w2"]) + p["b2"], 0.0)
    h = jnp.einsum("bij,bjf->bif", adj, h @ p["w3"]) + p["b3"]
    return h


if __name__ == "__main__":
    # GCN(nfeat=16, first_hidden=32, second_hidden=32, third_hidden=32, dropout=...)
    B, N, NFEAT = 4, 16, 16
    H1 = H2 = H3 = 32

    key = jax.random.PRNGKey(0)
    k_params, k_x, k_adj = jax.random.split(key, 3)

    params = init_gcn_params(k_params, NFEAT, H1, H2, H3)
    x = jax.random.normal(k_x, (B, N, NFEAT), jnp.float32)
    adj = jax.random.uniform(k_adj, (B, N, N), jnp.float32) / N

    out = gcn_forward(x, adj, params)
    out = jax.block_until_ready(out)

    ref = _reference_forward(x, adj, params)

    assert out.shape == (B, N, H3)
    assert bool(jnp.all(jnp.isfinite(out)))
    # bf16 MXU operands -> tolerance loosened vs. the pure-f32 reference.
    assert bool(jnp.allclose(out, ref, atol=2e-2, rtol=2e-2))
    print("KERNEL_OK")
</pallas_src>

<mosaic_0001>
module attributes {stable_mosaic.version = 11 : i64} {
  func.func @kernel(%arg0: memref<64x16xf32, #tpu.memory_space<vmem>>, %arg1: memref<64x64xf32, #tpu.memory_space<vmem>>, %arg2: memref<104x128xf32, #tpu.memory_space<vmem>>, %arg3: memref<64x128xf32, #tpu.memory_space<vmem>>) attributes {dimension_semantics = [], scalar_prefetch = 0 : i64, scratch_operands = 0 : i64, tpu.core_type = #tpu.core_type<tc>} {
    %c0 = arith.constant 0 : index
    %c0_0 = arith.constant 0 : index
    %0 = vector.load %arg1[%c0, %c0_0] : memref<64x64xf32, #tpu.memory_space<vmem>>, vector<64x64xf32>
    %1 = arith.truncf %0 : vector<64x64xf32> to vector<64x64xbf16>
    %c0_1 = arith.constant 0 : index
    %c0_2 = arith.constant 0 : index
    %2 = vector.load %arg0[%c0_1, %c0_2] : memref<64x16xf32, #tpu.memory_space<vmem>>, vector<64x16xf32>
    %3 = arith.truncf %2 : vector<64x16xf32> to vector<64x16xbf16>
    %c0_3 = arith.constant 0 : index
    %c0_4 = arith.constant 0 : index
    %4 = vector.load %arg2[%c0_3, %c0_4] : memref<104x128xf32, #tpu.memory_space<vmem>>, vector<16x32xf32>
    %5 = arith.truncf %4 : vector<16x32xf32> to vector<16x32xbf16>
    %c16 = arith.constant 16 : index
    %c0_5 = arith.constant 0 : index
    %6 = vector.load %arg2[%c16, %c0_5] : memref<104x128xf32, #tpu.memory_space<vmem>>, vector<1x32xf32>
    %cst = arith.constant dense<0.000000e+00> : vector<64x32xf32>
    %7 = tpu.matmul %3, %5, %cst {dimension_numbers = #tpu.dot_dimension_numbers<[1], [0], [0], [1], [0, 0, 1, 1], [], []>} : vector<64x16xbf16>, vector<16x32xbf16>, vector<64x32xf32> -> vector<64x32xf32>
    %8 = arith.truncf %7 : vector<64x32xf32> to vector<64x32xbf16>
    %cst_6 = arith.constant dense<0.000000e+00> : vector<64x32xf32>
    %9 = tpu.matmul %1, %8, %cst_6 {dimension_numbers = #tpu.dot_dimension_numbers<[1], [0], [0], [1], [0, 0, 1, 1], [], []>} : vector<64x64xbf16>, vector<64x32xbf16>, vector<64x32xf32> -> vector<64x32xf32>
    %10 = vector.broadcast %6 : vector<1x32xf32> to vector<64x32xf32>
    %11 = arith.addf %9, %10 : vector<64x32xf32>
    %cst_7 = arith.constant 0.000000e+00 : f32
    %12 = vector.broadcast %cst_7 : f32 to vector<64x32xf32>
    %13 = arith.maximumf %11, %12 : vector<64x32xf32>
    %14 = arith.truncf %13 : vector<64x32xf32> to vector<64x32xbf16>
    %c24 = arith.constant 24 : index
    %c0_8 = arith.constant 0 : index
    %15 = vector.load %arg2[%c24, %c0_8] : memref<104x128xf32, #tpu.memory_space<vmem>>, vector<32x32xf32>
    %16 = arith.truncf %15 : vector<32x32xf32> to vector<32x32xbf16>
    %c56 = arith.constant 56 : index
    %c0_9 = arith.constant 0 : index
    %17 = vector.load %arg2[%c56, %c0_9] : memref<104x128xf32, #tpu.memory_space<vmem>>, vector<1x32xf32>
    %cst_10 = arith.constant dense<0.000000e+00> : vector<64x32xf32>
    %18 = tpu.matmul %14, %16, %cst_10 {dimension_numbers = #tpu.dot_dimension_numbers<[1], [0], [0], [1], [0, 0, 1, 1], [], []>} : vector<64x32xbf16>, vector<32x32xbf16>, vector<64x32xf32> -> vector<64x32xf32>
    %19 = arith.truncf %18 : vector<64x32xf32> to vector<64x32xbf16>
    %cst_11 = arith.constant dense<0.000000e+00> : vector<64x32xf32>
    %20 = tpu.matmul %1, %19, %cst_11 {dimension_numbers = #tpu.dot_dimension_numbers<[1], [0], [0], [1], [0, 0, 1, 1], [], []>} : vector<64x64xbf16>, vector<64x32xbf16>, vector<64x32xf32> -> vector<64x32xf32>
    %21 = vector.broadcast %17 : vector<1x32xf32> to vector<64x32xf32>
    %22 = arith.addf %20, %21 : vector<64x32xf32>
    %cst_12 = arith.constant 0.000000e+00 : f32
    %23 = vector.broadcast %cst_12 : f32 to vector<64x32xf32>
    %24 = arith.maximumf %22, %23 : vector<64x32xf32>
    %25 = arith.truncf %24 : vector<64x32xf32> to vector<64x32xbf16>
    %c64 = arith.constant 64 : index
    %c0_13 = arith.constant 0 : index
    %26 = vector.load %arg2[%c64, %c0_13] : memref<104x128xf32, #tpu.memory_space<vmem>>, vector<32x128xf32>
    %27 = arith.truncf %26 : vector<32x128xf32> to vector<32x128xbf16>
    %c96 = arith.constant 96 : index
    %c0_14 = arith.constant 0 : index
    %28 = vector.load %arg2[%c96, %c0_14] : memref<104x128xf32, #tpu.memory_space<vmem>>, vector<1x128xf32>
    %cst_15 = arith.constant dense<0.000000e+00> : vector<64x128xf32>
    %29 = tpu.matmul %25, %27, %cst_15 {dimension_numbers = #tpu.dot_dimension_numbers<[1], [0], [0], [1], [0, 0, 1, 1], [], []>} : vector<64x32xbf16>, vector<32x128xbf16>, vector<64x128xf32> -> vector<64x128xf32>
    %30 = arith.truncf %29 : vector<64x128xf32> to vector<64x128xbf16>
    %cst_16 = arith.constant dense<0.000000e+00> : vector<64x128xf32>
    %31 = tpu.matmul %1, %30, %cst_16 {dimension_numbers = #tpu.dot_dimension_numbers<[1], [0], [0], [1], [0, 0, 1, 1], [], []>} : vector<64x64xbf16>, vector<64x128xbf16>, vector<64x128xf32> -> vector<64x128xf32>
    %32 = vector.broadcast %28 : vector<1x128xf32> to vector<64x128xf32>
    %33 = arith.addf %31, %32 : vector<64x128xf32>
    %c0_17 = arith.constant 0 : index
    %c0_18 = arith.constant 0 : index
    %34 = vector.load %arg3[%c0_17, %c0_18] : memref<64x128xf32, #tpu.memory_space<vmem>>, vector<64x128xf32>
    tpu.vector_store %arg3[%c0_17, %c0_18], %33 {strides = array<i32>} : memref<64x128xf32, #tpu.memory_space<vmem>>, vector<64x128xf32>,
    return
  }
}

</mosaic_0001>

<bundles_post_ra>
// kernel: tpu_custom_call.1
= control target key start
LH: loop header
LB: loop body
LE: loop exit
PB: predicated region body
PF: predicated region fallthrough
CT: control target
= control target key end

     0   :  { %8 = vsyncpa [#allocation3], 0  ;;  %s577_s0 = inlined_call_operand.vmem [shape: f32[64,16], index: 0, kind: input, shape index: {}]   ;;  %s578_s1 = inlined_call_operand.vmem [shape: f32[64,64], index: 1, kind: input, shape index: {}]   ;;  %s579_s2 = inlined_call_operand.hbm [shape: f32[104,128], index: 2, kind: input, shape index: {}]   ;;  %s580_s3 = inlined_call_operand.hbm [shape: f32[64,128], index: 3, kind: output, shape index: {}]  }
   0x1   :  { %9 = vsyncpa [#allocation4], 0  ;;  %s18_s14 = sshll.u32 %s579_s2, 4  ;;  %s453_s15 = smov [#allocation2]   ;;  %s19_s14 = int_to_ptr.hbm [resolvable:$true] %s18_s14 }
   0x2   :  { %s20_s16 = sshll.u32 %s453_s15, 4  ;;  %s454_s17 = smov 128   ;;  %s21_s16 = int_to_ptr.vmem [resolvable:$true] %s20_s16 }
   0x3   :  { %s455_s18 = smov 8  }
   0x4   :  { %26 = dma.hbm_to_vmem [thread:$0]  %s19_s14, 1664, %s21_s16, [#allocation3], %s454_s17, %s454_s17, %s455_s18  }
   0x5   :  { %449 = dma.done.wait [#allocation3], 1664  }
   0x6   :  { %450 = vsyncadd [#allocation3], 4294965632  ;;  %v56_v0 = vld [vmem:[#allocation2] sm:$0xff]  ;;  %v57_v1 = vld [vmem:[#allocation2 + $0x8] sm:$0xff]  ;;  %vm60_vm0 = vcmask 130048   ;;  %vm107_vm1 = vcmask 523264  }
   0x7   :  { %v46_v2 = vld [vmem:[%s577_s0 + $0x10] sm:$0xff]  ;;  %v58_v3 = vpack.c.bf16 %v57_v1, %v56_v0  ;;  %v47_v4 = vld [vmem:[%s577_s0 + $0x18] sm:$0xff]  ;;  %v44_v6 = vld [vmem:[%s577_s0] sm:$0xff]  ;;  %vm168_vm2 = vcmask 261120   ;;  %s352_s26 = sshll.u32 %s580_s3, 4  ;;  %s353_s26 = int_to_ptr.hbm [resolvable:$true] %s352_s26 }
   0x8   :  { %v53_v5 = vpack.c.bf16 %v47_v4, %v46_v2  ;;  %v45_v7 = vld [vmem:[%s577_s0 + $0x8] sm:$0xff]  ;;  %v48_v9 = vld [vmem:[%s577_s0 + $0x20] sm:$0xff]  ;;  %v50_v12 = vld [vmem:[%s577_s0 + $0x30] sm:$0xff] }
   0x9   :  { %389 = vmatpush.bf16.msra.mxu3 %v58_v3  ;;  %80 = vmatpush.bf16.msra.mxu0 %v58_v3  ;;  %v52_v8 = vpack.c.bf16 %v45_v7, %v44_v6  ;;  %v49_v10 = vld [vmem:[%s577_s0 + $0x28] sm:$0xff]  ;;  %v51_v13 = vld [vmem:[%s577_s0 + $0x38] sm:$0xff]  ;;  %v32_v26 = vld [vmem:[%s578_s1] sm:$0xff] }
   0xa   :  { %v54_v11 = vpack.c.bf16 %v49_v10, %v48_v9  ;;  %v55_v14 = vpack.c.bf16 %v51_v13, %v50_v12  ;;  %v33_v27 = vld [vmem:[%s578_s1 + $0x8] sm:$0xff]  ;;  %v34_v30 = vld [vmem:[%s578_s1 + $0x10] sm:$0xff]  ;;  %v35_v31 = vld [vmem:[%s578_s1 + $0x18] sm:$0xff] }
   0xb   :  { %v513_v29 = vpack.c.bf16 %v33_v27, %v32_v26  ;;  %v523_v32 = vpack.c.bf16 %v35_v31, %v34_v30  ;;  %v36_v33 = vld [vmem:[%s578_s1 + $0x20] sm:$0xff]  ;;  %v37_v34 = vld [vmem:[%s578_s1 + $0x28] sm:$0xff]  ;;  %v38_v36 = vld [vmem:[%s578_s1 + $0x30] sm:$0xff] }
   0xc   :  { %366 = vmatmul.msk.bf16.vlgmr.msra.gmra.mxu3 %vm60_vm0, %v53_v5  ;;  %365 = vmatmul.msk.bf16.vlgmr.msra.gmra.mxu0 %vm60_vm0, %v52_v8  ;;  %v533_v35 = vpack.c.bf16 %v37_v34, %v36_v33  ;;  %v39_v37 = vld [vmem:[%s578_s1 + $0x38] sm:$0xff]  ;;  %v163_v39 = vld [vmem:[#allocation2 + $0x28] sm:$0xff]  ;;  %v164_v40 = vld [vmem:[#allocation2 + $0x30] sm:$0xff]  ;;  %s456_s1 = smov [#allocation5]  }
   0xd   :  { %v543_v38 = vpack.c.bf16 %v39_v37, %v38_v36  ;;  %v166_v41 = vpack.c.bf16 %v164_v40, %v163_v39  ;;  %v161_v42 = vld [vmem:[#allocation2 + $0x18] sm:$0xff]  ;;  %v162_v43 = vld [vmem:[#allocation2 + $0x20] sm:$0xff]  ;;  %v398_v46 = vld [vmem:[#allocation2 + $0x10] ss:$0 sm:$0xff]  ;;  %s350_s23 = sshll.u32 %s456_s1, 4  ;;  %s351_s23 = int_to_ptr.vmem [resolvable:$true] %s350_s23 }
   0xe   :  { %v165_v44 = vpack.c.bf16 %v162_v43, %v161_v42  ;;  %v257_v26 = vld [vmem:[#allocation2 + $0x48] sm:$0xff]  ;;  %v399_v30 = vld [vmem:[#allocation2 + $0x38] ss:$0 sm:$0xff] }
   0xf   :  { %187 = vmatpush.bf16.msrb.mxu0 %v166_v41  ;;  %391 = vmatpush.bf16.msra.mxu2 %v166_v41 }
  0x13   :  { %188 = vmatpush.bf16.msrb.mxu0 %v165_v44  ;;  %393 = vmatpush.bf16.msra.mxu2 %v165_v44 }
  0x1c   :  { %367 = vmatmul.msk.bf16.gmra.mxu3 %vm60_vm0, %v54_v11 }
  0x2c   :  { %368 = vmatmul.msk.bf16.gmra.mxu3 %vm60_vm0, %v55_v14 }
  0x89   :  { %v82_v20 = vpop.f32.mrf.mxu0 }
  0x8f   :  { %v87_v15 = vpop.f32.mrf.mxu3 }
  0x91   :  { %v84_v25 = vpop.f32.mrf.mxu0 }
  0x92   :  { %v102_v28 = vpack.c.bf16 %v84_v25, %v82_v20  ;;  %v256_v25 = vld [vmem:[#allocation2 + $0x40] sm:$0xff] }
  0x93   :  { %v260_v27 = vpack.c.bf16 %v257_v26, %v256_v25 }
  0x97   :  { %v89_v16 = vpop.f32.mrf.mxu3 }
  0x98   :  { %v103_v24 = vpack.c.bf16 %v89_v16, %v87_v15 }
  0x9f   :  { %v92_v17 = vpop.f32.mrf.mxu3 }
  0xa7   :  { %v94_v18 = vpop.f32.mrf.mxu3 }
  0xa8   :  { %v104_v23 = vpack.c.bf16 %v94_v18, %v92_v17 }
  0xaf   :  { %v97_v19 = vpop.f32.mrf.mxu3 }
  0xb7   :  { %v99_v21 = vpop.f32.mrf.mxu3 }
  0xb8   :  { %v105_v22 = vpack.c.bf16 %v99_v21, %v97_v19 }
  0xba   :  { %124 = vmatpush.bf16.msra.mxu1 %v105_v22  ;;  %v258_v22 = vld [vmem:[#allocation2 + $0x50] sm:$0xff] }
  0xbe   :  { %125 = vmatpush.bf16.msra.mxu1 %v104_v23  ;;  %v259_v23 = vld [vmem:[#allocation2 + $0x58] sm:$0xff] }
  0xc2   :  { %126 = vmatpush.bf16.msra.mxu1 %v103_v24  ;;  %v261_v24 = vpack.c.bf16 %v259_v23, %v258_v22 }
  0xc4   :  { %281 = vmatpush.bf16.msra.mxu0 %v261_v24 }
  0xc6   :  { %127 = vmatpush.bf16.msra.mxu1 %v102_v28 }
  0xc8   :  { %282 = vmatpush.bf16.msra.mxu0 %v260_v27 }
  0xc9   :  { %369 = vmatmul.msk.bf16.vlgmr.msra.gmra.mxu1 %vm107_vm1, %v513_v29 }
  0xca   :  { %390 = vmatpush.bf16.msrb.mxu1 %v166_v41 }
  0xce   :  { %392 = vmatpush.bf16.msrb.mxu1 %v165_v44 }
  0xd9   :  { %370 = vmatmul.msk.bf16.gmra.mxu1 %vm107_vm1, %v523_v32 }
  0xe9   :  { %371 = vmatmul.msk.bf16.gmra.mxu1 %vm107_vm1, %v533_v35 }
  0xf9   :  { %372 = vmatmul.msk.bf16.gmra.mxu1 %vm107_vm1, %v543_v38 }
 0x146   :  { %v129_v45 = vpop.f32.mrf.mxu1 }
 0x147   :  { %v130_v47 = vadd.f32 %v398_v46, %v129_v45 }
 0x149   :  { %v149_v50 = vmax.f32 %v130_v47, 0.0 }
 0x14e   :  { %v131_v48 = vpop.f32.mrf.mxu1 }
 0x14f   :  { %v132_v49 = vadd.f32 %v398_v46, %v131_v48 }
 0x151   :  { %v150_v51 = vmax.f32 %v132_v49, 0.0 }
 0x153   :  { %v157_v52 = vpack.c.bf16 %v150_v51, %v149_v50 }
 0x155   :  { %373 = vmatmul.msk.bf16.vlgmr.msrb.gmra.mxu0 %vm168_vm2, %v157_v52 }
 0x156   :  { %v134_v53 = vpop.f32.mrf.mxu1 }
 0x157   :  { %v135_v54 = vadd.f32 %v398_v46, %v134_v53 }
 0x159   :  { %v151_v57 = vmax.f32 %v135_v54, 0.0 }
 0x15e   :  { %v136_v55 = vpop.f32.mrf.mxu1 }
 0x15f   :  { %v137_v56 = vadd.f32 %v398_v46, %v136_v55 }
 0x161   :  { %v152_v58 = vmax.f32 %v137_v56, 0.0 }
 0x163   :  { %v158_v59 = vpack.c.bf16 %v152_v58, %v151_v57 }
 0x165   :  { %374 = vmatmul.msk.bf16.vlgmr.msrb.gmra.mxu1 %vm168_vm2, %v158_v59 }
 0x166   :  { %v139_v60 = vpop.f32.mrf.mxu1 }
 0x167   :  { %v140_v61 = vadd.f32 %v398_v46, %v139_v60 }
 0x169   :  { %v153_v0 = vmax.f32 %v140_v61, 0.0 }
 0x16e   :  { %v141_v62 = vpop.f32.mrf.mxu1 }
 0x16f   :  { %v142_v63 = vadd.f32 %v398_v46, %v141_v62 }
 0x171   :  { %v154_v1 = vmax.f32 %v142_v63, 0.0 }
 0x173   :  { %v159_v2 = vpack.c.bf16 %v154_v1, %v153_v0 }
 0x175   :  { %375 = vmatmul.msk.bf16.vlgmr.msra.gmra.mxu2 %vm168_vm2, %v159_v2 }
 0x176   :  { %v144_v3 = vpop.f32.mrf.mxu1 }
 0x177   :  { %v145_v4 = vadd.f32 %v398_v46, %v144_v3 }
 0x179   :  { %v155_v7 = vmax.f32 %v145_v4, 0.0 }
 0x17e   :  { %v146_v5 = vpop.f32.mrf.mxu1 }
 0x17f   :  { %v147_v6 = vadd.f32 %v398_v46, %v146_v5 }
 0x181   :  { %v156_v8 = vmax.f32 %v147_v6, 0.0 }
 0x183   :  { %v160_v9 = vpack.c.bf16 %v156_v8, %v155_v7 }
 0x185   :  { %376 = vmatmul.msk.bf16.gmra.mxu2 %vm168_vm2, %v160_v9  ;;  %v400_v9 = vld [vmem:[#allocation2 + $0x60] ss:$0 sm:$0xff] }
 0x1d2   :  { %v190_v14 = vpop.f32.mrf.mxu0 }
 0x1da   :  { %v192_v20 = vpop.f32.mrf.mxu0 }
 0x1db   :  { %v210_v21 = vpack.c.bf16 %v192_v20, %v190_v14 }
 0x1e2   :  { %v195_v13 = vpop.f32.mrf.mxu1 }
 0x1ea   :  { %v197_v18 = vpop.f32.mrf.mxu1 }
 0x1eb   :  { %v211_v19 = vpack.c.bf16 %v197_v18, %v195_v13 }
 0x1f8   :  { %v200_v10 = vpop.f32.mrf.mxu2 }
 0x200   :  { %v202_v11 = vpop.f32.mrf.mxu2 }
 0x201   :  { %v212_v17 = vpack.c.bf16 %v202_v11, %v200_v10 }
 0x208   :  { %v205_v12 = vpop.f32.mrf.mxu2 }
 0x210   :  { %v207_v15 = vpop.f32.mrf.mxu2 }
 0x211   :  { %v213_v16 = vpack.c.bf16 %v207_v15, %v205_v12 }
 0x213   :  { %219 = vmatpush.bf16.msrb.mxu3 %v213_v16 }
 0x217   :  { %220 = vmatpush.bf16.msrb.mxu3 %v212_v17 }
 0x21b   :  { %221 = vmatpush.bf16.msrb.mxu3 %v211_v19 }
 0x21f   :  { %222 = vmatpush.bf16.msrb.mxu3 %v210_v21 }
 0x222   :  { %377 = vmatmul.msk.bf16.vlgmr.msrb.gmra.mxu3 %vm107_vm1, %v513_v29 }
 0x232   :  { %378 = vmatmul.msk.bf16.gmra.mxu3 %vm107_vm1, %v523_v32 }
 0x242   :  { %379 = vmatmul.msk.bf16.gmra.mxu3 %vm107_vm1, %v533_v35 }
 0x252   :  { %380 = vmatmul.msk.bf16.gmra.mxu3 %vm107_vm1, %v543_v38 }
 0x2a5   :  { %v224_v28 = vpop.f32.mrf.mxu3 }
 0x2a6   :  { %v225_v31 = vadd.f32 %v399_v30, %v224_v28 }
 0x2a8   :  { %v244_v36 = vmax.f32 %v225_v31, 0.0 }
 0x2ad   :  { %v226_v33 = vpop.f32.mrf.mxu3 }
 0x2ae   :  { %v227_v34 = vadd.f32 %v399_v30, %v226_v33 }
 0x2b0   :  { %v245_v37 = vmax.f32 %v227_v34, 0.0 }
 0x2b2   :  { %v252_v39 = vpack.c.bf16 %v245_v37, %v244_v36 }
 0x2b4   :  { %381 = vmatmul.msk.bf16.vlgmr.msra.gmra.mxu0 %vm168_vm2, %v252_v39 }
 0x2b5   :  { %v229_v40 = vpop.f32.mrf.mxu3 }
 0x2b6   :  { %v230_v41 = vadd.f32 %v399_v30, %v229_v40 }
 0x2b8   :  { %v246_v44 = vmax.f32 %v230_v41, 0.0 }
 0x2bd   :  { %v231_v42 = vpop.f32.mrf.mxu3 }
 0x2be   :  { %v232_v43 = vadd.f32 %v399_v30, %v231_v42 }
 0x2c0   :  { %v247_v45 = vmax.f32 %v232_v43, 0.0 }
 0x2c2   :  { %v253_v46 = vpack.c.bf16 %v247_v45, %v246_v44 }
 0x2c4   :  { %382 = vmatmul.msk.bf16.gmra.mxu0 %vm168_vm2, %v253_v46 }
 0x2c5   :  { %v234_v47 = vpop.f32.mrf.mxu3 }
 0x2c6   :  { %v235_v48 = vadd.f32 %v399_v30, %v234_v47 }
 0x2c8   :  { %v248_v51 = vmax.f32 %v235_v48, 0.0 }
 0x2cd   :  { %v236_v49 = vpop.f32.mrf.mxu3 }
 0x2ce   :  { %v237_v50 = vadd.f32 %v399_v30, %v236_v49 }
 0x2d0   :  { %v249_v52 = vmax.f32 %v237_v50, 0.0 }
 0x2d2   :  { %v254_v53 = vpack.c.bf16 %v249_v52, %v248_v51 }
 0x2d4   :  { %383 = vmatmul.msk.bf16.gmra.mxu0 %vm168_vm2, %v254_v53 }
 0x2d5   :  { %v239_v54 = vpop.f32.mrf.mxu3 }
 0x2d6   :  { %v240_v55 = vadd.f32 %v399_v30, %v239_v54 }
 0x2d8   :  { %v250_v58 = vmax.f32 %v240_v55, 0.0 }
 0x2dd   :  { %v241_v56 = vpop.f32.mrf.mxu3 }
 0x2de   :  { %v242_v57 = vadd.f32 %v399_v30, %v241_v56 }
 0x2e0   :  { %v251_v59 = vmax.f32 %v242_v57, 0.0 }
 0x2e2   :  { %v255_v60 = vpack.c.bf16 %v251_v59, %v250_v58 }
 0x2e4   :  { %384 = vmatmul.msk.bf16.gmra.mxu0 %vm168_vm2, %v255_v60 }
 0x331   :  { %v284_v61 = vpop.f32.mrf.mxu0 }
 0x339   :  { %v286_v62 = vpop.f32.mrf.mxu0 }
 0x33a   :  { %v304_v8 = vpack.c.bf16 %v286_v62, %v284_v61 }
 0x341   :  { %v289_v63 = vpop.f32.mrf.mxu0 }
 0x349   :  { %v291_v0 = vpop.f32.mrf.mxu0 }
 0x34a   :  { %v305_v7 = vpack.c.bf16 %v291_v0, %v289_v63 }
 0x351   :  { %v294_v1 = vpop.f32.mrf.mxu0 }
 0x359   :  { %v296_v2 = vpop.f32.mrf.mxu0 }
 0x35a   :  { %v306_v6 = vpack.c.bf16 %v296_v2, %v294_v1 }
 0x361   :  { %v299_v3 = vpop.f32.mrf.mxu0 }
 0x369   :  { %v301_v4 = vpop.f32.mrf.mxu0 }
 0x36a   :  { %v307_v5 = vpack.c.bf16 %v301_v4, %v299_v3 }
 0x36c   :  { %313 = vmatpush.bf16.msrb.mxu2 %v307_v5 }
 0x370   :  { %314 = vmatpush.bf16.msrb.mxu2 %v306_v6 }
 0x374   :  { %315 = vmatpush.bf16.msrb.mxu2 %v305_v7 }
 0x378   :  { %316 = vmatpush.bf16.msrb.mxu2 %v304_v8 }
 0x37b   :  { %385 = vmatmul.msk.bf16.vlgmr.msrb.gmra.mxu2 %vm107_vm1, %v513_v29 }
 0x38b   :  { %386 = vmatmul.msk.bf16.gmra.mxu2 %vm107_vm1, %v523_v32 }
 0x39b   :  { %387 = vmatmul.msk.bf16.gmra.mxu2 %vm107_vm1, %v533_v35 }
 0x3ab   :  { %388 = vmatmul.msk.bf16.gmra.mxu2 %vm107_vm1, %v543_v38 }
 0x3fe   :  { %v318_v10 = vpop.f32.mrf.mxu2 }
 0x3ff   :  { %v319_v11 = vadd.f32 %v400_v9, %v318_v10 }
 0x401   :  { %338 = vst [vmem:[#allocation5] sm:$0xff] %v319_v11 }
 0x406   :  { %v320_v12 = vpop.f32.mrf.mxu2 }
 0x407   :  { %v321_v13 = vadd.f32 %v400_v9, %v320_v12 }
 0x409   :  { %339 = vst [vmem:[#allocation5 + $0x8] sm:$0xff] %v321_v13 }
 0x40e   :  { %v323_v14 = vpop.f32.mrf.mxu2 }
 0x40f   :  { %v324_v15 = vadd.f32 %v400_v9, %v323_v14 }
 0x411   :  { %340 = vst [vmem:[#allocation5 + $0x10] sm:$0xff] %v324_v15 }
 0x416   :  { %v325_v29 = vpop.f32.mrf.mxu2 }
 0x417   :  { %v326_v16 = vadd.f32 %v400_v9, %v325_v29 }
 0x419   :  { %341 = vst [vmem:[#allocation5 + $0x18] sm:$0xff] %v326_v16 }
 0x41e   :  { %v328_v32 = vpop.f32.mrf.mxu2 }
 0x41f   :  { %v329_v17 = vadd.f32 %v400_v9, %v328_v32 }
 0x421   :  { %342 = vst [vmem:[#allocation5 + $0x20] sm:$0xff] %v329_v17 }
 0x426   :  { %v330_v35 = vpop.f32.mrf.mxu2 }
 0x427   :  { %v331_v18 = vadd.f32 %v400_v9, %v330_v35 }
 0x429   :  { %343 = vst [vmem:[#allocation5 + $0x28] sm:$0xff] %v331_v18 }
 0x42e   :  { %v333_v38 = vpop.f32.mrf.mxu2 }
 0x42f   :  { %v334_v19 = vadd.f32 %v400_v9, %v333_v38 }
 0x431   :  { %344 = vst [vmem:[#allocation5 + $0x30] sm:$0xff] %v334_v19 }
 0x436   :  { %v335_v20 = vpop.f32.mrf.mxu2 }
 0x437   :  { %v336_v21 = vadd.f32 %v400_v9, %v335_v20 }
 0x439   :  { %345 = vst [vmem:[#allocation5 + $0x38] sm:$0xff] %v336_v21 }
 0x43a   :  { %358 = dma.vmem_to_hbm [thread:$0]  %s351_s23, 1024, %s353_s26, [#allocation4], %s454_s17, %s454_s17, %s455_s18  }
 0x43b   :  { %451 = dma.done.wait [#allocation4], 1024  }
 0x43c   :  { %452 = vsyncadd [#allocation4], 4294966272 }
 0x43d   :  { %363 = vsyncpa [#allocation3], 1 }
 0x43e   :  { %364 = vsyncpa [#allocation4], 1 }

</bundles_post_ra>
